<compile_context>
chip_gen: v7x
topology: tpu7x:2x2x1
jax: 0.10.0
libtpu: 0.0.40
codegen_flags: <defaults>
</compile_context>

<pallas_src>
import functools

import jax
import jax.numpy as jnp
from jax.experimental import pallas as pl
from jax.experimental.pallas import tpu as pltpu


# ----------------------------------------------------------------------------
# Kernels
# ----------------------------------------------------------------------------
def _layernorm_kernel(x_ref, g_ref, b_ref, o_ref, *, eps, d):
    # x_ref: (tm, d)  token tile; g_ref/b_ref: (1, d) scale/shift; o_ref: (tm, d)
    x = x_ref[...].astype(jnp.float32)
    mean = jnp.mean(x, axis=-1, keepdims=True)
    xc = x - mean
    # torch.Tensor.std is the *unbiased* estimator (divide by d - 1).
    var = jnp.sum(xc * xc, axis=-1, keepdims=True) / (d - 1)
    std = jnp.sqrt(var)
    y = g_ref[...].astype(jnp.float32) * xc / (std + eps) \
        + b_ref[...].astype(jnp.float32)
    o_ref[...] = y.astype(o_ref.dtype)


def _residual_add_kernel(x_ref, y_ref, o_ref):
    # o = x + sublayer_out   (pure VPU, memory-bound)
    o_ref[...] = x_ref[...] + y_ref[...]


# ----------------------------------------------------------------------------
# Wrappers
# ----------------------------------------------------------------------------
def _round_up(x, m):
    return ((x + m - 1) // m) * m


def _pick_row_tile(m, tm):
    # Keep tm a multiple of 8 (f32 sublane) and never larger than needed.
    return max(8, min(_round_up(tm, 8), _round_up(m, 8)))


def _pad_rows(x2d, m_pad):
    m = x2d.shape[0]
    if m_pad == m:
        return x2d
    return jnp.pad(x2d, ((0, m_pad - m), (0, 0)))


def layernorm_2d(x2d, gamma, beta, *, eps=1e-6, tm=256):
    """LayerNorm over the last axis of x2d: [M, d]."""
    m, d = x2d.shape
    tm = _pick_row_tile(m, tm)
    m_pad = pl.cdiv(m, tm) * tm
    xp = _pad_rows(x2d, m_pad)          # padded zero rows -> output b_2, sliced off
    g2 = gamma.reshape(1, d).astype(x2d.dtype)
    b2 = beta.reshape(1, d).astype(x2d.dtype)
    itemsize = jnp.dtype(x2d.dtype).itemsize

    out = pl.pallas_call(
        functools.partial(_layernorm_kernel, eps=eps, d=d),
        out_shape=jax.ShapeDtypeStruct((m_pad, d), x2d.dtype),
        grid_spec=pltpu.PrefetchScalarGridSpec(
            num_scalar_prefetch=0,
            grid=(m_pad // tm,),
            in_specs=[
                pl.BlockSpec((tm, d), lambda i: (i, 0)),   # x tile
                pl.BlockSpec((1, d), lambda i: (0, 0)),    # gamma (a_2)
                pl.BlockSpec((1, d), lambda i: (0, 0)),    # beta  (b_2)
            ],
            out_specs=pl.BlockSpec((tm, d), lambda i: (i, 0)),
        ),
        compiler_params=pltpu.CompilerParams(
            dimension_semantics=("parallel",),
            vmem_limit_bytes=64 << 20,
        ),
        cost_estimate=pl.CostEstimate(
            flops=8 * m_pad * d,
            transcendentals=m_pad,
            bytes_accessed=(2 * m_pad * d + 2 * d) * itemsize,
        ),
    )(xp, g2, b2)
    return out[:m]


def residual_add_2d(x2d, y2d, *, tm=256):
    """x2d + y2d, both [M, d]."""
    m, d = x2d.shape
    tm = _pick_row_tile(m, tm)
    m_pad = pl.cdiv(m, tm) * tm
    xp = _pad_rows(x2d, m_pad)
    yp = _pad_rows(y2d.astype(x2d.dtype), m_pad)
    itemsize = jnp.dtype(x2d.dtype).itemsize

    out = pl.pallas_call(
        _residual_add_kernel,
        out_shape=jax.ShapeDtypeStruct((m_pad, d), x2d.dtype),
        grid_spec=pltpu.PrefetchScalarGridSpec(
            num_scalar_prefetch=0,
            grid=(m_pad // tm,),
            in_specs=[
                pl.BlockSpec((tm, d), lambda i: (i, 0)),
                pl.BlockSpec((tm, d), lambda i: (i, 0)),
            ],
            out_specs=pl.BlockSpec((tm, d), lambda i: (i, 0)),
        ),
        compiler_params=pltpu.CompilerParams(
            dimension_semantics=("parallel",),
            vmem_limit_bytes=64 << 20,
        ),
        cost_estimate=pl.CostEstimate(
            flops=m_pad * d,
            transcendentals=0,
            bytes_accessed=3 * m_pad * d * itemsize,
        ),
    )(xp, yp)
    return out[:m]


def sublayer_connection(x, a_2, b_2, sublayer_fn, *, eps=1e-6, tm=256):
    """y = x + sublayer_fn(LayerNorm(x)); x: [..., d_model]."""
    orig_shape = x.shape
    d = orig_shape[-1]
    x2d = x.reshape(-1, d)

    normed = layernorm_2d(x2d, a_2, b_2, eps=eps, tm=tm).reshape(orig_shape)

    # TODO(synk): the arbitrary `sublayer` callable has no generic Pallas
    # equivalent; it runs as a plain JAX function between the two kernels.
    sub_out = sublayer_fn(normed)

    out2d = residual_add_2d(x2d, sub_out.reshape(-1, d), tm=tm)
    return out2d.reshape(orig_shape).astype(x.dtype)


# ----------------------------------------------------------------------------
# Reference (pure JAX, mirrors the PyTorch module)
# ----------------------------------------------------------------------------
def _reference(x, a_2, b_2, sublayer_fn, eps=1e-6):
    mean = x.mean(-1, keepdims=True)
    var = ((x - mean) ** 2).sum(-1, keepdims=True) / (x.shape[-1] - 1)
    std = jnp.sqrt(var)
    normed = a_2 * (x - mean) / (std + eps) + b_2
    return x + sublayer_fn(normed)


if __name__ == "__main__":
    # Small shapes consistent with the module: x is [batch, seq, d_model].
    # d_model=128 keeps the last axis lane-dense (multiple of 128).
    batch, seq, d_model = 2, 8, 128

    key = jax.random.PRNGKey(0)
    kx, ka, kb, kw, kbias = jax.random.split(key, 5)

    x = jax.random.normal(kx, (batch, seq, d_model), dtype=jnp.float32)
    # Non-trivial LayerNorm parameters (initialized near ones / zeros).
    a_2 = 1.0 + 0.1 * jax.random.normal(ka, (d_model,), dtype=jnp.float32)
    b_2 = 0.1 * jax.random.normal(kb, (d_model,), dtype=jnp.float32)

    # Example sublayer: a small Linear + ReLU, applied as a plain JAX fn.
    lim = 1.0 / (d_model ** 0.5)
    w = jax.random.uniform(kw, (d_model, d_model), jnp.float32, -lim, lim)
    bias = jax.random.uniform(kbias, (d_model,), jnp.float32, -lim, lim)

    def sublayer_fn(h):
        return jnp.maximum(h @ w + bias, 0.0)

    out = sublayer_connection(x, a_2, b_2, sublayer_fn, eps=1e-6)
    out = jax.block_until_ready(out)

    ref = _reference(x, a_2, b_2, sublayer_fn, eps=1e-6)
    assert out.shape == x.shape and out.dtype == x.dtype
    assert jnp.allclose(out, ref, atol=1e-5, rtol=1e-5), "mismatch vs reference"

    print("KERNEL_OK")
</pallas_src>

<mosaic_0001>
module attributes {stable_mosaic.version = 11 : i64} {
  func.func @_layernorm_kernel(%arg0: i32, %arg1: memref<16x128xf32, #tpu.memory_space<vmem>>, %arg2: memref<1x128xf32, #tpu.memory_space<vmem>>, %arg3: memref<1x128xf32, #tpu.memory_space<vmem>>, %arg4: memref<16x128xf32, #tpu.memory_space<vmem>>) attributes {dimension_semantics = [#tpu.dimension_semantics<parallel>], iteration_bounds = array<i64: 1>, scalar_prefetch = 0 : i64, scratch_operands = 0 : i64, tpu.core_type = #tpu.core_type<tc>, window_params = [{transform_indices = @transform_0, window_bounds = array<i64: 16, 128>}, {pipeline_mode = #tpu.pipeline_mode<synchronous>, transform_indices = @transform_1, window_bounds = array<i64: 1, 128>}, {pipeline_mode = #tpu.pipeline_mode<synchronous>, transform_indices = @transform_2, window_bounds = array<i64: 1, 128>}, {transform_indices = @transform_3, window_bounds = array<i64: 16, 128>}]} {
    %c0 = arith.constant 0 : index
    %c0_0 = arith.constant 0 : index
    %0 = vector.load %arg1[%c0, %c0_0] : memref<16x128xf32, #tpu.memory_space<vmem>>, vector<16x128xf32>
    %cst = arith.constant dense<0.000000e+00> : vector<16xf32>
    %1 = vector.multi_reduction <add>, %0, %cst [1] : vector<16x128xf32> to vector<16xf32>
    %2 = vector.shape_cast %1 : vector<16xf32> to vector<16x1xf32>
    %cst_1 = arith.constant 1.280000e+02 : f32
    %3 = vector.broadcast %cst_1 : f32 to vector<16x1xf32>
    %4 = arith.divf %2, %3 : vector<16x1xf32>
    %5 = vector.broadcast %4 : vector<16x1xf32> to vector<16x128xf32>
    %6 = arith.subf %0, %5 : vector<16x128xf32>
    %7 = arith.mulf %6, %6 : vector<16x128xf32>
    %cst_2 = arith.constant dense<0.000000e+00> : vector<16xf32>
    %8 = vector.multi_reduction <add>, %7, %cst_2 [1] : vector<16x128xf32> to vector<16xf32>
    %9 = vector.shape_cast %8 : vector<16xf32> to vector<16x1xf32>
    %cst_3 = arith.constant 1.270000e+02 : f32
    %10 = vector.broadcast %cst_3 : f32 to vector<16x1xf32>
    %11 = arith.divf %9, %10 : vector<16x1xf32>
    %12 = math.sqrt %11 : vector<16x1xf32>
    %c0_4 = arith.constant 0 : index
    %c0_5 = arith.constant 0 : index
    %13 = vector.load %arg2[%c0_4, %c0_5] : memref<1x128xf32, #tpu.memory_space<vmem>>, vector<1x128xf32>
    %14 = vector.broadcast %13 : vector<1x128xf32> to vector<16x128xf32>
    %15 = arith.mulf %14, %6 : vector<16x128xf32>
    %cst_6 = arith.constant 9.99999997E-7 : f32
    %16 = vector.broadcast %cst_6 : f32 to vector<16x1xf32>
    %17 = arith.addf %12, %16 : vector<16x1xf32>
    %18 = vector.broadcast %17 : vector<16x1xf32> to vector<16x128xf32>
    %19 = arith.divf %15, %18 : vector<16x128xf32>
    %c0_7 = arith.constant 0 : index
    %c0_8 = arith.constant 0 : index
    %20 = vector.load %arg3[%c0_7, %c0_8] : memref<1x128xf32, #tpu.memory_space<vmem>>, vector<1x128xf32>
    %21 = vector.broadcast %20 : vector<1x128xf32> to vector<16x128xf32>
    %22 = arith.addf %19, %21 : vector<16x128xf32>
    %c0_9 = arith.constant 0 : index
    %c0_10 = arith.constant 0 : index
    %23 = vector.load %arg4[%c0_9, %c0_10] : memref<16x128xf32, #tpu.memory_space<vmem>>, vector<16x128xf32>
    tpu.vector_store %arg4[%c0_9, %c0_10], %22 {strides = array<i32>} : memref<16x128xf32, #tpu.memory_space<vmem>>, vector<16x128xf32>,
    return
  }
  func.func @transform_0(%arg0: i32) -> (i32, i32) {
    %c0_i32 = arith.constant 0 : i32
    %c0_i32_0 = arith.constant 0 : i32
    return %arg0, %c0_i32 : i32, i32
  }
  func.func @transform_1(%arg0: i32) -> (i32, i32) {
    %c0_i32 = arith.constant 0 : i32
    %c0_i32_0 = arith.constant 0 : i32
    %c0_i32_1 = arith.constant 0 : i32
    return %c0_i32, %c0_i32_0 : i32, i32
  }
  func.func @transform_2(%arg0: i32) -> (i32, i32) {
    %c0_i32 = arith.constant 0 : i32
    %c0_i32_0 = arith.constant 0 : i32
    %c0_i32_1 = arith.constant 0 : i32
    return %c0_i32, %c0_i32_0 : i32, i32
  }
  func.func @transform_3(%arg0: i32) -> (i32, i32) {
    %c0_i32 = arith.constant 0 : i32
    %c0_i32_0 = arith.constant 0 : i32
    return %arg0, %c0_i32 : i32, i32
  }
}

</mosaic_0001>

<bundles_post_ra>
// kernel: tpu_custom_call.1
= control target key start
LH: loop header
LB: loop body
LE: loop exit
PB: predicated region body
PF: predicated region fallthrough
CT: control target
= control target key end

     0   :  { %8 = vsyncpa [#allocation3], 0  ;;  %s327_s0 = inlined_call_operand.hbm [shape: f32[16,128], index: 0, kind: input, shape index: {}]   ;;  %s328_s1 = inlined_call_operand.hbm [shape: f32[1,128], index: 1, kind: input, shape index: {}]   ;;  %s329_s2 = inlined_call_operand.hbm [shape: f32[1,128], index: 2, kind: input, shape index: {}]   ;;  %s330_s3 = inlined_call_operand.hbm [shape: f32[16,128], index: 3, kind: output, shape index: {}]  }
   0x1   :  { %9 = vsyncpa [#allocation6], 0 }
   0x2   :  { %10 = vsyncpa [#allocation4], 0  ;;  %s240_s12 = smov [#allocation5]   ;;  %s241_s14 = smov [#allocation2]  }
   0x3   :  { %s29_s13 = sshll.u32 %s240_s12, 4  ;;  %s16_s15 = sshll.u32 %s241_s14, 4  ;;  %s30_s13 = int_to_ptr.vmem [resolvable:$true] %s29_s13  ;;  %s266_s15 = int_to_ptr.vmem [resolvable:$true] %s16_s15 }
   0x4   :  { %s146_s18 = scalar_lea.hbm %s328_s1, 16 }
   0x5   :  { %p147_p0 = scmp.ne.s32.totalorder %s328_s1, %s146_s18  ;;  %p150_p1 = scmp.lt.u32.totalorder %s146_s18, %s328_s1 }
   0x7   :  { %p152_p2 = pnand %p150_p1, %p147_p0 }
   0x9   :  { %155 = shalt.err (!%p152_p2)
}
   0xa   :  { %s156_s23 = scalar_lea.vmem %s30_s13, 16  ;;  %s160_s24 = scalar_lea.vmem %s30_s13, 32 }
   0xb   :  { %p157_p3 = scmp.ne.s32.totalorder %s30_s13, %s156_s23  ;;  %p161_p4 = scmp.lt.s32.totalorder %s30_s13, %s30_s13 }
   0xc   :  { %p162_p5 = scmp.lt.s32.totalorder %s160_s24, %s156_s23 }
   0xe   :  { %p163_p6 = por %p162_p5, %p161_p4 }
  0x10   :  { %p164_p7 = pnand %p163_p6, %p157_p3 }
  0x12   :  { %167 = shalt.err (!%p164_p7)
}
  0x13   :  { %32 = dma.hbm_to_vmem [thread:$0]  %s328_s1, 16, %s30_s13, [#allocation6]  }
  0x14   :  { %s168_s29 = scalar_lea.hbm %s327_s0, 256 }
  0x15   :  { %p169_p8 = scmp.ne.s32.totalorder %s327_s0, %s168_s29  ;;  %p172_p9 = scmp.lt.u32.totalorder %s168_s29, %s327_s0 }
  0x17   :  { %p174_p10 = pnand %p172_p9, %p169_p8 }
  0x19   :  { %177 = shalt.err (!%p174_p10)
}
  0x1a   :  { %s178_s7 = scalar_lea.vmem %s266_s15, 256  ;;  %p183_p12 = scmp.lt.s32.totalorder %s266_s15, %s266_s15 }
  0x1b   :  { %p179_p11 = scmp.ne.s32.totalorder %s266_s15, %s178_s7  ;;  %p184_p13 = scmp.lt.s32.totalorder %s178_s7, %s178_s7 }
  0x1d   :  { %p185_p0 = por %p184_p13, %p183_p12 }
  0x1f   :  { %p186_p1 = pnand %p185_p0, %p179_p11 }
  0x21   :  { %189 = shalt.err (!%p186_p1)
}
  0x22   :  { %s242_s1 = smov 128   ;;  %s243_s8 = smov 8  }
  0x23   :  { %22 = dma.hbm_to_vmem [thread:$0]  %s327_s0, 256, %s266_s15, [#allocation3], %s242_s1, %s242_s1, %s243_s8  }
  0x24   :  { %s244_s11 = smov [#allocation7]   ;;  %s190_s16 = scalar_lea.hbm %s329_s2, 16 }
  0x25   :  { %s39_s12 = sshll.u32 %s244_s11, 4  ;;  %p191_p2 = scmp.ne.s32.totalorder %s329_s2, %s190_s16  ;;  %s40_s12 = int_to_ptr.vmem [resolvable:$true] %s39_s12 }
  0x26   :  { %p194_p3 = scmp.lt.u32.totalorder %s190_s16, %s329_s2 }
  0x28   :  { %p196_p4 = pnand %p194_p3, %p191_p2 }
  0x2a   :  { %199 = shalt.err (!%p196_p4)
}
  0x2b   :  { %s200_s21 = scalar_lea.vmem %s40_s12, 16  ;;  %s204_s0 = scalar_lea.vmem %s40_s12, 32 }
  0x2c   :  { %p201_p5 = scmp.ne.s32.totalorder %s40_s12, %s200_s21  ;;  %p205_p6 = scmp.lt.s32.totalorder %s40_s12, %s40_s12 }
  0x2d   :  { %p206_p7 = scmp.lt.s32.totalorder %s204_s0, %s200_s21 }
  0x2f   :  { %p207_p8 = por %p206_p7, %p205_p6 }
  0x31   :  { %p208_p9 = pnand %p207_p8, %p201_p5 }
  0x33   :  { %211 = shalt.err (!%p208_p9)
}
  0x34   :  { %42 = dma.hbm_to_vmem [thread:$0]  %s329_s2, 16, %s40_s12, [#allocation6]  }
  0x35   :  { %234 = dma.done.wait [#allocation3], 256  }
  0x36   :  { %235 = vsyncadd [#allocation3], 4294967040 }
  0x37   :  { %236 = dma.done.wait [#allocation6], 32  }
  0x38   :  { %237 = vsyncadd [#allocation6], 4294967264  ;;  %v52_v0 = vld [vmem:[#allocation2] sm:$0xff]  ;;  %v53_v1 = vld [vmem:[#allocation2 + $0x8] sm:$0xff]  ;;  %s245_s2 = smov [#allocation8]  }
  0x39   :  { %54 = vadd.xlane.f32.xlu0 %v52_v0  ;;  %v130_v26 = vld [vmem:[#allocation5] ss:$0 sm:$0xff]  ;;  %v131_v29 = vld [vmem:[#allocation7] ss:$0 sm:$0xff]  ;;  %s117_s23 = sshll.u32 %s245_s2, 4  ;;  %s118_s23 = int_to_ptr.vmem [resolvable:$true] %s117_s23 }
  0x3a   :  { %s212_s24 = scalar_lea.vmem %s118_s23, 256  ;;  %p217_p11 = scmp.lt.s32.totalorder %s118_s23, %s118_s23 }
  0x3b   :  { %p213_p10 = scmp.ne.s32.totalorder %s118_s23, %s212_s24  ;;  %p218_p12 = scmp.lt.s32.totalorder %s212_s24, %s212_s24 }
  0x3d   :  { %56 = vadd.xlane.f32.xlu0 %v53_v1  ;;  %p219_p13 = por %p218_p12, %p217_p11 }
  0x3f   :  { %p220_p0 = pnand %p219_p13, %p213_p10 }
  0xc6   :  { %v55_v2 = vpop.xlane.xlu0 %54 }
  0xc7   :  { %v59_v3 = vmul.f32 0.0078125, %v55_v2 }
  0xc9   :  { %v61_v4 = vsub.f32 %v52_v0, %v59_v3 }
  0xca   :  { %v57_v5 = vpop.xlane.xlu0 %56 }
  0xcb   :  { %v60_v6 = vmul.f32 0.0078125, %v57_v5  ;;  %v63_v7 = vmul.f32 %v61_v4, %v61_v4  ;;  %v93_v27 = vmul.f32 %v130_v26, %v61_v4 }
  0xcd   :  { %v62_v8 = vsub.f32 %v53_v1, %v60_v6  ;;  %65 = vadd.xlane.f32.xlu1 %v63_v7 }
  0xcf   :  { %v64_v9 = vmul.f32 %v62_v8, %v62_v8  ;;  %v94_v31 = vmul.f32 %v130_v26, %v62_v8 }
  0xd1   :  { %67 = vadd.xlane.f32.xlu1 %v64_v9 }
 0x15a   :  { %v66_v10 = vpop.xlane.xlu1 %65 }
 0x15b   :  { %v70_v11 = vmul.f32 0.007874016, %v66_v10 }
 0x15d   :  { %138 = vrsqrt.f32 %v70_v11  ;;  %vm74_vm0 = vcmp.eq.f32.partialorder %v70_v11, inf  ;;  %v77_v16 = vand.u32 2147483648, %v70_v11  ;;  %vm76_vm1 = vcmp.eq.f32.partialorder %v70_v11, 0.0 }
 0x15e   :  { %v68_v12 = vpop.xlane.xlu1 %67 }
 0x15f   :  { %v71_v13 = vmul.f32 0.007874016, %v68_v12 }
 0x161   :  { %140 = vrsqrt.f32 %v71_v13  ;;  %vm81_vm2 = vcmp.eq.f32.partialorder %v71_v13, inf  ;;  %v84_v22 = vand.u32 2147483648, %v71_v13  ;;  %vm83_vm3 = vcmp.eq.f32.partialorder %v71_v13, 0.0 }
 0x167   :  { %v139_v14 = vpop.eup %138 }
 0x168   :  { %v73_v15 = vmul.f32 %v139_v14, %v70_v11 }
 0x16a   :  { %v75_v17 = vsel %vm74_vm0, %v70_v11, %v73_v15 }
 0x16b   :  { %v141_v18 = vpop.eup %140  ;;  %v78_v19 = vsel %vm76_vm1, %v77_v16, %v75_v17 }
 0x16c   :  { %v80_v20 = vmul.f32 %v141_v18, %v71_v13  ;;  %v95_v21 = vadd.f32 1e-06, %v78_v19 }
 0x16e   :  { %v82_v23 = vsel %vm81_vm2, %v71_v13, %v80_v20  ;;  %142 = vrcp.f32 %v95_v21 }
 0x16f   :  { %v85_v24 = vsel %vm83_vm3, %v84_v22, %v82_v23 }
 0x170   :  { %v96_v25 = vadd.f32 1e-06, %v85_v24 }
 0x172   :  { %144 = vrcp.f32 %v96_v25 }
 0x178   :  { %v143_v28 = vpop.eup %142 }
 0x179   :  { %v98_v30 = vmul.f32 %v143_v28, %v93_v27 }
 0x17b   :  { %v108_v32 = vadd.f32 %v131_v29, %v98_v30 }
 0x17c   :  { %v145_v33 = vpop.eup %144 }
 0x17d   :  { %v100_v34 = vmul.f32 %v145_v33, %v94_v31  ;;  %110 = vst [vmem:[#allocation8] sm:$0xff] %v108_v32 }
 0x17f   :  { %v109_v35 = vadd.f32 %v131_v29, %v100_v34 }
 0x181   :  { %111 = vst [vmem:[#allocation8 + $0x8] sm:$0xff] %v109_v35 }
 0x182   :  { %223 = shalt.err (!%p220_p0)
}
 0x183   :  { %s224_s27 = scalar_lea.hbm %s330_s3, 256 }
 0x184   :  { %p225_p1 = scmp.ne.s32.totalorder %s330_s3, %s224_s27  ;;  %p228_p2 = scmp.lt.u32.totalorder %s224_s27, %s330_s3 }
 0x186   :  { %p230_p3 = pnand %p228_p2, %p225_p1 }
 0x188   :  { %233 = shalt.err (!%p230_p3)
}
 0x189   :  { %123 = dma.vmem_to_hbm [thread:$0]  %s118_s23, 256, %s330_s3, [#allocation4], %s242_s1, %s242_s1, %s243_s8  }
 0x18a   :  { %238 = dma.done.wait [#allocation4], 256  }
 0x18b   :  { %239 = vsyncadd [#allocation4], 4294967040 }
 0x18c   :  { %127 = vsyncpa [#allocation3], 1 }
 0x18d   :  { %128 = vsyncpa [#allocation6], 1 }
 0x18e   :  { %129 = vsyncpa [#allocation4], 1 }

</bundles_post_ra>
